<compile_context>
chip_gen: v6e
topology: v6e:2x2x1
jax: 0.10.0
libtpu: 0.0.40
codegen_flags: <defaults>
</compile_context>

<pallas_src>
import math
import functools

import jax
import jax.numpy as jnp
from jax import lax
from jax.experimental import pallas as pl
from jax.experimental.pallas import tpu as pltpu


# ---------------------------------------------------------------------------
# Stage 1: H = D^{-1/2} ⊙ (X @ W)    (output cast to bf16 for the MXU path)
# ---------------------------------------------------------------------------
def _h_kernel(x_ref, w_ref, d_ref, h_ref):
    # x_ref: (1, t, F_in), w_ref: (F_in, F_out), d_ref: (1, t, 1)
    h = jnp.dot(x_ref[0], w_ref[...], preferred_element_type=jnp.float32)
    h_ref[0] = (h * d_ref[0]).astype(h_ref.dtype)


def _compute_h(x, w, d, *, tile, out_dtype):
    B, N, f_in = x.shape
    f_out = w.shape[1]
    return pl.pallas_call(
        _h_kernel,
        out_shape=jax.ShapeDtypeStruct((B, N, f_out), out_dtype),
        grid_spec=pltpu.PrefetchScalarGridSpec(
            num_scalar_prefetch=0,
            grid=(B, N // tile),
            in_specs=[
                pl.BlockSpec((1, tile, f_in), lambda b, i: (b, i, 0)),
                pl.BlockSpec((f_in, f_out),   lambda b, i: (0, 0)),
                pl.BlockSpec((1, tile, 1),    lambda b, i: (b, i, 0)),
            ],
            out_specs=pl.BlockSpec((1, tile, f_out), lambda b, i: (b, i, 0)),
        ),
        compiler_params=pltpu.CompilerParams(
            dimension_semantics=("parallel", "parallel")),
    )(x, w, d)


# ---------------------------------------------------------------------------
# Stage 2: out = relu( D^{-1/2} ⊙ (A @ H) + b )  (+ X if residual)
# ---------------------------------------------------------------------------
def _gcn_kernel(*refs, residual):
    if residual:
        d_ref, h_ref, adj_ref, b_ref, x_ref, o_ref, acc_ref = refs
    else:
        d_ref, h_ref, adj_ref, b_ref, o_ref, acc_ref = refs
        x_ref = None

    k = pl.program_id(2)
    nk = pl.num_programs(2)

    # init accumulator at the start of the column-tile reduction
    @pl.when(k == 0)
    def _():
        acc_ref[...] = jnp.zeros_like(acc_ref)

    # A[i-tile, k-tile] @ H[k-tile]  on the bf16 MXU path (f32 accumulation).
    adj_t = adj_ref[0]
    if adj_t.dtype == jnp.int8:
        adj_t = adj_t.astype(jnp.bfloat16)      # cheap VPU upcast; exact for 0/1
    acc_ref[...] += jnp.dot(adj_t, h_ref[0], preferred_element_type=jnp.float32)

    # finalize: row-side D^{-1/2}, bias, ReLU (+ residual)
    @pl.when(k == nk - 1)
    def _():
        out = acc_ref[...] * d_ref[0] + b_ref[...]
        out = jnp.maximum(out, 0.0)
        if residual:
            out = out + x_ref[0]                # needs F_in == F_out
        o_ref[0] = out.astype(o_ref.dtype)


# ---------------------------------------------------------------------------
# Wrappers
# ---------------------------------------------------------------------------
def preprocess_adjacency(adj, stream_dtype=jnp.bfloat16):
    """Degree normalization + low-precision streaming copy of the adjacency.

    The adjacency is layer-invariant, so call this ONCE per graph/batch and
    reuse the result across every GCN layer / step instead of re-reading and
    re-casting the full f32 N^2 array per call.  bf16 / int8 copies are exact
    for 0/1 adjacencies (int8 halves the HBM bytes); pass stream_dtype=None to
    keep a weighted adjacency in full f32.
    """
    deg = jnp.sum(adj.astype(jnp.float32), axis=-1, keepdims=True) + 1e-10
    d = deg ** -0.5                      # (B, N, 1) f32; torch's isnan guard is
                                         # dead code (deg > 0 for A >= 0).
    adj_s = adj if stream_dtype is None else adj.astype(stream_dtype)
    return adj_s, d


def _pick_tile(n):
    # >=512-wide tiles amortize the ~0.35 us/step grid overhead and approach
    # the HBM roofline; fall back to full dim for tiny graphs.
    for t in (512, 256, 128):
        if n >= t and n % t == 0:
            return t
    return n


def _block_bytes(block_shape, dtype, buffers=2):
    """VMEM bytes for a pipelined block, including sublane/lane padding."""
    it = jnp.dtype(dtype).itemsize
    sub = {4: 8, 2: 16, 1: 32}.get(it, 8)
    dims = list(block_shape)
    dims[-1] = -(-dims[-1] // 128) * 128
    if len(dims) >= 2:
        dims[-2] = -(-dims[-2] // sub) * sub
    n = 1
    for s in dims:
        n *= s
    return n * it * buffers


def my_gcn(x, adj, weight, bias=None, *, residual=False, adj_prep=None,
           stream_dtype=jnp.bfloat16, tm=None, tk=None):
    """Forward pass of MyGCN.

    adj_prep: optional (adj_stream, d) from preprocess_adjacency(); pass it to
    avoid re-touching the full N^2 adjacency on every layer call.
    """
    B, N, f_in = x.shape
    f_out = weight.shape[1]
    if residual:
        assert f_in == f_out, "residual requires in_features == out_features"

    if adj_prep is None:
        adj_prep = preprocess_adjacency(adj, stream_dtype=stream_dtype)
    adj_s, d = adj_prep

    tm = _pick_tile(N) if tm is None else tm
    tk = _pick_tile(N) if tk is None else tk
    assert N % tm == 0 and N % tk == 0, "N must be divisible by the tile sizes"

    # H in bf16 when the adjacency is streamed low-precision (bf16 MXU path);
    # keep it f32 when the adjacency stays f32 (weighted / exact path).
    h_dtype = jnp.float32 if adj_s.dtype == jnp.float32 else jnp.bfloat16
    h = _compute_h(x, weight, d, tile=tm, out_dtype=h_dtype)

    bias2d = (jnp.zeros((1, f_out), jnp.float32) if bias is None
              else bias.reshape(1, f_out).astype(jnp.float32))

    in_specs = [
        pl.BlockSpec((1, tm, 1),     lambda b, i, k: (b, i, 0)),   # d rows
        pl.BlockSpec((1, tk, f_out), lambda b, i, k: (b, k, 0)),   # H rows
        pl.BlockSpec((1, tm, tk),    lambda b, i, k: (b, i, k),    # adjacency
                     pipeline_mode=pl.Buffered(3)),
        pl.BlockSpec((1, f_out),     lambda b, i, k: (0, 0)),      # bias
    ]
    inputs = [d, h, adj_s, bias2d]
    if residual:
        in_specs.append(pl.BlockSpec((1, tm, f_in), lambda b, i, k: (b, i, 0)))
        inputs.append(x)

    # Working set is N-independent; only raise the scoped VMEM limit if the
    # padded estimate exceeds the most restrictive default (v5e: 16 MiB).
    est = (_block_bytes((1, tm, 1), jnp.float32)
           + _block_bytes((1, tk, f_out), h_dtype)
           + _block_bytes((1, tm, tk), adj_s.dtype, buffers=3)
           + _block_bytes((1, f_out), jnp.float32)
           + (_block_bytes((1, tm, f_in), x.dtype) if residual else 0)
           + _block_bytes((1, tm, f_out), x.dtype)
           + _block_bytes((tm, f_out), jnp.float32, buffers=1)
           + (2 << 20))                                    # headroom
    compiler_kwargs = dict(
        # no cross-row-tile carry anymore -> row axis is parallel too
        # (shards across both TensorCores on v7x even for B == 1).
        dimension_semantics=("parallel", "parallel", "arbitrary"))
    if est > (16 << 20):
        compiler_kwargs["vmem_limit_bytes"] = int(est)

    kernel = functools.partial(_gcn_kernel, residual=residual)

    return pl.pallas_call(
        kernel,
        out_shape=jax.ShapeDtypeStruct((B, N, f_out), x.dtype),
        grid_spec=pltpu.PrefetchScalarGridSpec(
            num_scalar_prefetch=0,
            grid=(B, N // tm, N // tk),
            in_specs=in_specs,
            out_specs=pl.BlockSpec((1, tm, f_out), lambda b, i, k: (b, i, 0)),
            scratch_shapes=[
                pltpu.VMEM((tm, f_out), jnp.float32),   # reduction accumulator
            ],
        ),
        compiler_params=pltpu.CompilerParams(**compiler_kwargs),
    )(*inputs)


# ---------------------------------------------------------------------------
# Pure-JAX reference mirroring the PyTorch forward
# ---------------------------------------------------------------------------
def _reference(x, adj, weight, bias, residual=False):
    d = jnp.sum(adj, axis=-1, keepdims=True) + 1e-10
    d = d ** -0.5
    d = jnp.where(jnp.isnan(d), 1.0, d)
    adj_n = adj * d
    adj_n = adj_n * jnp.transpose(d, (0, 2, 1))
    h = jnp.einsum('bnf,fo->bno', x, weight, precision=lax.Precision.HIGHEST)
    h = jnp.einsum('bnm,bmo->bno', adj_n, h, precision=lax.Precision.HIGHEST)
    if bias is not None:
        h = h + bias
    h = jnp.maximum(h, 0.0)
    if residual:
        h = h + x
    return h


if __name__ == "__main__":
    # Lane-dense, tile-friendly shapes: feature dims are multiples of 128 and
    # N is a multiple of the tile sizes so the tiled reduction is exercised.
    B, N, F_IN, F_OUT = 2, 512, 128, 128

    key = jax.random.PRNGKey(0)
    k_x, k_adj, k_w, k_b = jax.random.split(key, 4)

    # parameters matching reset_parameters(): uniform(-stdv, stdv),
    # stdv = 1 / sqrt(out_features)
    stdv = 1.0 / math.sqrt(F_OUT)
    weight = jax.random.uniform(k_w, (F_IN, F_OUT), jnp.float32,
                                minval=-stdv, maxval=stdv)
    bias = jax.random.uniform(k_b, (F_OUT,), jnp.float32,
                              minval=-stdv, maxval=stdv)

    x = jax.random.normal(k_x, (B, N, F_IN), jnp.float32)
    adj = (jax.random.uniform(k_adj, (B, N, N), jnp.float32) > 0.5
           ).astype(jnp.float32)

    # Preprocess (degree vector + low-precision adjacency copy) ONCE and reuse
    # it across layer calls — the adjacency is layer-invariant.
    prep_bf16 = preprocess_adjacency(adj, stream_dtype=jnp.bfloat16)
    prep_int8 = preprocess_adjacency(adj, stream_dtype=jnp.int8)

    cases = [
        # bf16 adjacency stream, big 512-wide tiles (grid (B,1,1))
        (False, prep_bf16, None, None),
        # residual + 128x128 tiles: exercises the k-tile accumulator path
        (True,  prep_bf16, 128,  128),
        # int8 adjacency stream (half the HBM bytes; exact for 0/1 adjacency)
        (False, prep_int8, 256,  256),
    ]
    for residual, prep, tm, tk in cases:
        out = my_gcn(x, adj, weight, bias, residual=residual,
                     adj_prep=prep, tm=tm, tk=tk)
        out = jax.block_until_ready(out)
        ref = _reference(x, adj, weight, bias, residual=residual)
        assert out.shape == (B, N, F_OUT)
        err = float(jnp.max(jnp.abs(out - ref)))
        assert jnp.allclose(out, ref, atol=1e-3, rtol=1e-3), (
            "max abs diff = %g (residual=%s)" % (err, residual))

    print("KERNEL_OK")
</pallas_src>

<mosaic_0001>
module attributes {stable_mosaic.version = 11 : i64} {
  func.func @_h_kernel(%arg0: i32, %arg1: i32, %arg2: memref<1x512x128xf32, #tpu.memory_space<vmem>>, %arg3: memref<128x128xf32, #tpu.memory_space<vmem>>, %arg4: memref<1x512x1xf32, #tpu.memory_space<vmem>>, %arg5: memref<1x512x128xbf16, #tpu.memory_space<vmem>>) attributes {dimension_semantics = [#tpu.dimension_semantics<parallel>, #tpu.dimension_semantics<parallel>], iteration_bounds = array<i64: 2, 1>, scalar_prefetch = 0 : i64, scratch_operands = 0 : i64, tpu.core_type = #tpu.core_type<tc>, window_params = [{transform_indices = @transform_0, window_bounds = array<i64: 1, 512, 128>}, {pipeline_mode = #tpu.pipeline_mode<synchronous>, transform_indices = @transform_1, window_bounds = array<i64: 128, 128>}, {transform_indices = @transform_2, window_bounds = array<i64: 1, 512, 1>}, {transform_indices = @transform_3, window_bounds = array<i64: 1, 512, 128>}]} {
    %c0 = arith.constant 0 : index
    %c0_0 = arith.constant 0 : index
    %c0_1 = arith.constant 0 : index
    %0 = vector.load %arg2[%c0, %c0_0, %c0_1] : memref<1x512x128xf32, #tpu.memory_space<vmem>>, vector<1x512x128xf32>
    %1 = vector.shape_cast %0 : vector<1x512x128xf32> to vector<512x128xf32>
    %c0_2 = arith.constant 0 : index
    %c0_3 = arith.constant 0 : index
    %2 = vector.load %arg3[%c0_2, %c0_3] : memref<128x128xf32, #tpu.memory_space<vmem>>, vector<128x128xf32>
    %cst = arith.constant dense<0.000000e+00> : vector<512x128xf32>
    %3 = tpu.matmul %1, %2, %cst {dimension_numbers = #tpu.dot_dimension_numbers<[1], [0], [0], [1], [0, 0, 1, 1], [], []>} : vector<512x128xf32>, vector<128x128xf32>, vector<512x128xf32> -> vector<512x128xf32>
    %c0_4 = arith.constant 0 : index
    %c0_5 = arith.constant 0 : index
    %c0_6 = arith.constant 0 : index
    %4 = vector.load %arg4[%c0_4, %c0_5, %c0_6] : memref<1x512x1xf32, #tpu.memory_space<vmem>>, vector<1x512x1xf32>
    %5 = vector.shape_cast %4 : vector<1x512x1xf32> to vector<512x1xf32>
    %6 = vector.broadcast %5 : vector<512x1xf32> to vector<512x128xf32>
    %7 = arith.mulf %3, %6 : vector<512x128xf32>
    %8 = arith.truncf %7 : vector<512x128xf32> to vector<512x128xbf16>
    %c0_7 = arith.constant 0 : index
    %c0_8 = arith.constant 0 : index
    %c0_9 = arith.constant 0 : index
    %9 = vector.load %arg5[%c0_7, %c0_8, %c0_9] : memref<1x512x128xbf16, #tpu.memory_space<vmem>>, vector<1x512x128xbf16>
    %10 = vector.shape_cast %9 : vector<1x512x128xbf16> to vector<512x128xbf16>
    %11 = vector.shape_cast %8 : vector<512x128xbf16> to vector<1x512x128xbf16>
    tpu.vector_store %arg5[%c0_7, %c0_8, %c0_9], %11 {strides = array<i32>} : memref<1x512x128xbf16, #tpu.memory_space<vmem>>, vector<1x512x128xbf16>,
    return
  }
  func.func @transform_0(%arg0: i32, %arg1: i32) -> (i32, i32, i32) {
    %c0_i32 = arith.constant 0 : i32
    %c0_i32_0 = arith.constant 0 : i32
    return %arg0, %arg1, %c0_i32 : i32, i32, i32
  }
  func.func @transform_1(%arg0: i32, %arg1: i32) -> (i32, i32) {
    %c0_i32 = arith.constant 0 : i32
    %c0_i32_0 = arith.constant 0 : i32
    %c0_i32_1 = arith.constant 0 : i32
    return %c0_i32, %c0_i32_0 : i32, i32
  }
  func.func @transform_2(%arg0: i32, %arg1: i32) -> (i32, i32, i32) {
    %c0_i32 = arith.constant 0 : i32
    %c0_i32_0 = arith.constant 0 : i32
    return %arg0, %arg1, %c0_i32 : i32, i32, i32
  }
  func.func @transform_3(%arg0: i32, %arg1: i32) -> (i32, i32, i32) {
    %c0_i32 = arith.constant 0 : i32
    %c0_i32_0 = arith.constant 0 : i32
    return %arg0, %arg1, %c0_i32 : i32, i32, i32
  }
}

</mosaic_0001>

<bundles_post_ra>
// kernel: tpu_custom_call.1
= control target key start
LH: loop header
LB: loop body
LE: loop exit
PB: predicated region body
PF: predicated region fallthrough
CT: control target
= control target key end

     0   :  { %8 = vsyncpa [#allocation3], 0  ;;  %s2826_s0 = inlined_call_operand.vmem [shape: f32[2,512,128], index: 0, kind: input, shape index: {}]   ;;  %s2827_s1 = inlined_call_operand.hbm [shape: f32[128,128], index: 1, kind: input, shape index: {}]   ;;  %s2828_s2 = inlined_call_operand.vmem [shape: f32[2,512,1], index: 2, kind: input, shape index: {}]   ;;  %s2829_s3 = inlined_call_operand.hbm [shape: bf16[2,512,128], index: 3, kind: output, shape index: {}]  }
   0x1   :  { %9 = vsyncpa [#allocation4], 0 }
   0x2   :  { %11 = vsyncpa [#allocation4 + $0x1], 0  ;;  %s2396_s12 = smov 0   ;;  %s2398_s13 = smov 0  }
   0x3   :  { %s2400_s14 = smov 0   ;;  %s2402_s15 = smov 0  }
   0x4   :  { %s2404_s16 = smov 0   ;;  %s2406_s17 = smov 0  }
   0x5 LB: > { %s1609_s18 = sadd.s32 4294967295, %s2367_s17   ;;  %s1610_s19 = sadd.s32 4294967294, %s2367_s17   ;;  %s2367_s17 = sphi %s2406_s17, %s17_s17   ;;  %s2363_s16 = sphi %s2404_s16, %s2838_s16   ;;  %s2359_s15 = sphi %s2402_s15, %s2837_s15   ;;  %s2355_s14 = sphi %s2400_s14, %s2836_s14   ;;  %s2351_s13 = sphi %s2398_s13, %s2835_s13   ;;  %s2347_s12 = sphi %s2396_s12, %s2834_s12  }
   0x6   : > { %s29_s20 = sadd.s32 1, %s2363_s16  ;;  %s115_s21 = sadd.s32 1, %s2355_s14 }
   0x7   : > { %p31_p0 = scmp.ge.s32.totalorder %s29_s20, 2  ;;  %p125_p1 = scmp.ne.s32.totalorder %s2355_s14, %s2351_s13 }
   0x8   : > { %p126_p2 = scmp.eq.s32.totalorder %s1609_s18, 1  ;;  %p131_p3 = scmp.ne.s32.totalorder %s2351_s13, %s2347_s12 }
   0x9   : > { %s2840_s20 = smov (%p31_p0, %s29_s20), 0  ;;  %p132_p5 = scmp.eq.s32.totalorder %s1610_s19, 1 }
   0xa   : > { %p2436_p4 = por %p126_p2, %p125_p1  ;;  %s110_s23 = ssub.s32 %s2363_s16, %s2840_s20 }
   0xb   : > { %p1611_p6 = scmp.ge.s32.totalorder %s2367_s17, 1  ;;  %p113_p7 = scmp.eq.s32.totalorder %s110_s23, 0 }
   0xc   : > { %p2443_p8 = por %p132_p5, %p131_p3  ;;  %p139_p9 = scmp.lt.s32.totalorder %s2367_s17, 3 }
   0xd   : > { %s2449_s25 = scalar_select %p113_p7, %s2355_s14, %s115_s21  }
   0xe   : > { %p2451_p10 = pnand %p1611_p6, %p139_p9  ;;  %p2455_p11 = scmp.eq.s32.totalorder %s1609_s18, 0 }
   0xf   : > { %s2369_s28 = smov [#allocation2]  }
  0x10   : > { %p2194_p12 = pneg %p2451_p10  ;;  %s151_s29 = sshll.u32 %s2369_s28, 4  ;;  %s152_s29 = int_to_ptr.vmem [resolvable:$true] %s151_s29 }
  0x11   : > { %s2272_s30 = scalar_lea.vmem %s152_s29, 2048  ;;  %p2280_p5 = scmp.lt.s32.totalorder %s152_s29, %s152_s29 }
  0x12   : > { %p2195_p13 = pnand %p2455_p11, %p2194_p12  ;;  %p2273_p1 = scmp.ne.s32.totalorder %s152_s29, %s2272_s30 }
  0x13   : > { %p2281_p6 = scmp.lt.s32.totalorder %s2272_s30, %s2272_s30 }
  0x14   : > { %p2263_p0 = pneg %p2195_p13 }
  0x15   : > { %p2282_p7 = por %p2281_p6, %p2280_p5 }
  0x16   : > { %p2275_p2 = pnand %p2273_p1, %p2263_p0 }
  0x18   : > { %p2276_p3 = pneg %p2275_p2 }
  0x1a   : > { %p2283_p9 = pnand %p2282_p7, %p2276_p3 }
  0x1c   : > { %2286 = shalt.err (!%p2283_p9)
}
  0x1d   : > { %s2370_s4 = smov 128   ;;  %s2371_s5 = smov 8  }
  0x1e   : > { %2197 = dma.hbm_to_vmem [thread:$0]  (!%p2195_p13), %s2827_s1, 2048, %s152_s29, [#allocation3], %s2370_s4, %s2370_s4, %s2371_s5  }
  0x1f   : > { %193 = sbr.rel (%p2451_p10) target bundleno = 354 (0x162), region = 32 }
  0x24   : > { %2338 = dma.done.wait (%p2455_p11), [#allocation3], 2048  }
  0x25   : > { %2340 = vsyncadd (%p2455_p11), [#allocation3], 4294965248  ;;  %p231_p12 = scmp.lt.s32.totalorder %s2359_s15, 1  ;;  %v2372_v0 = vmov 0   ;;  %v330_v3 = vld [vmem:[#allocation2 + $0x78] sm:$0xff]  ;;  %v329_v4 = vld [vmem:[#allocation2 + $0x70] sm:$0xff] }
  0x26   : > { %2260 = vset.pattern.permute.xlu1 %v2372_v0  ;;  %2259 = vset.pattern.permute.xlu0 %v2372_v0  ;;  %v328_v7 = vld [vmem:[#allocation2 + $0x68] sm:$0xff]  ;;  %v327_v8 = vld [vmem:[#allocation2 + $0x60] sm:$0xff]  ;;  %v326_v11 = vld [vmem:[#allocation2 + $0x58] sm:$0xff]  ;;  %s227_s26 = sand.u32 1, %s2351_s13   ;;  %s1756_s29 = sshll.u32 %s2359_s15, 12 }
  0x27   : > { %s2474_s8 = scalar_select %p231_p12, %s2359_s15, 1  ;;  %2028 = vmatprep.subr.mxu0 %v330_v3  ;;  %2156 = vmatprep.subr.mxu1 %v330_v3  ;;  %v325_v12 = vld [vmem:[#allocation2 + $0x50] sm:$0xff]  ;;  %v324_v15 = vld [vmem:[#allocation2 + $0x48] sm:$0xff]  ;;  %v323_v16 = vld [vmem:[#allocation2 + $0x40] sm:$0xff] }
  0x28   : > { %2029 = vmatpush3.msra.mxu0 %v330_v3  ;;  %2172 = vmatpush3.msra.mxu1 %v330_v3  ;;  %v322_v19 = vld [vmem:[#allocation2 + $0x38] sm:$0xff]  ;;  %v321_v20 = vld [vmem:[#allocation2 + $0x30] sm:$0xff]  ;;  %v320_v23 = vld [vmem:[#allocation2 + $0x28] sm:$0xff]  ;;  %s1616_s27 = sshll.u32 %s227_s26, 8  ;;  %s2773_s6 = scalar_lea.hbm %s2829_s3, %s1756_s29 }
  0x29   : > { %s1690_s9 = sshll.u32 %s2474_s8, 9  ;;  %2030 = vmatprep.subr.mxu0 %v329_v4  ;;  %2157 = vmatprep.subr.mxu1 %v329_v4  ;;  %v319_v24 = vld [vmem:[#allocation2 + $0x20] sm:$0xff]  ;;  %v318_v27 = vld [vmem:[#allocation2 + $0x18] sm:$0xff]  ;;  %v317_v28 = vld [vmem:[#allocation2 + $0x10] sm:$0xff]  ;;  %s2694_s28 = scalar_lea.vmem [#allocation5], %s1616_s27 }
  0x2a   : > { %s2482_s18 = scalar_lea.vmem %s2828_s2, %s1690_s9  ;;  %2031 = vmatpush3.msra.mxu0 %v329_v4  ;;  %2173 = vmatpush3.msra.mxu1 %v329_v4  ;;  %v316_v31 = vld [vmem:[#allocation2 + $0x8] sm:$0xff]  ;;  %s2505_s23 = scalar_lea.vmem %s2826_s0, %s1690_s9  ;;  %v315_v32 = vld [vmem:[#allocation2] sm:$0xff] }
  0x2b   : > { %v718_v1 = vld [vmem:[%s2482_s18 + $0x10] sm:$0xff]  ;;  %v716_v2 = vld [vmem:[%s2482_s18] sm:$0xff]  ;;  %v719_v5 = vld [vmem:[%s2482_s18 + $0x18] sm:$0xff]  ;;  %2032 = vmatprep.subr.mxu0 %v328_v7  ;;  %2158 = vmatprep.subr.mxu1 %v328_v7  ;;  %s1500_s30 = sshll.u32 %s2694_s28, 4  ;;  %s2781_s15 = scalar_lea.sflag [#allocation4], %s227_s26  ;;  %s2775_s30 = int_to_ptr.vmem [resolvable:$true] %s1500_s30 }
  0x2c   : > { %792 = vperm.xlu1 %2260, %v718_v1   ;;  %782 = vperm.xlu0 %2259, %v716_v2   ;;  %v717_v6 = vld [vmem:[%s2482_s18 + $0x8] sm:$0xff]  ;;  %v720_v10 = vld [vmem:[%s2482_s18 + $0x20] sm:$0xff]  ;;  %v723_v13 = vld [vmem:[%s2482_s18 + $0x38] sm:$0xff]  ;;  %s2287_s7 = scalar_lea.vmem %s2775_s30, 4096  ;;  %s2373_s8 = smov [#allocation5]  }
  0x2d   : > { %2033 = vmatpush3.msra.mxu0 %v328_v7  ;;  %2174 = vmatpush3.msra.mxu1 %v328_v7  ;;  %v721_v9 = vld [vmem:[%s2482_s18 + $0x28] sm:$0xff]  ;;  %v722_v14 = vld [vmem:[%s2482_s18 + $0x30] sm:$0xff]  ;;  %v724_v18 = vld [vmem:[%s2482_s18 + $0x40] sm:$0xff]  ;;  %p2288_p10 = scmp.ne.s32.totalorder %s2775_s30, %s2287_s7  ;;  %s2291_s9 = sshll.u32 %s2373_s8, 4  ;;  %s2292_s9 = int_to_ptr.vmem [resolvable:$false] %s2291_s9 }
  0x2e   : > { %2034 = vmatprep.subr.mxu0 %v327_v8  ;;  %2159 = vmatprep.subr.mxu1 %v327_v8  ;;  %v725_v17 = vld [vmem:[%s2482_s18 + $0x48] sm:$0xff]  ;;  %v727_v21 = vld [vmem:[%s2482_s18 + $0x58] sm:$0xff]  ;;  %v726_v22 = vld [vmem:[%s2482_s18 + $0x50] sm:$0xff]  ;;  %s2293_s10 = scalar_lea.vmem %s2292_s9, 8192  ;;  %p2294_p0 = scmp.lt.s32.totalorder %s2775_s30, %s2292_s9 }
  0x2f   : > { %2035 = vmatpush3.msra.mxu0 %v327_v8  ;;  %2175 = vmatpush3.msra.mxu1 %v327_v8  ;;  %v729_v25 = vld [vmem:[%s2482_s18 + $0x68] sm:$0xff]  ;;  %v728_v26 = vld [vmem:[%s2482_s18 + $0x60] sm:$0xff]  ;;  %v731_v29 = vld [vmem:[%s2482_s18 + $0x78] sm:$0xff]  ;;  %p2289_p11 = pnand %p2288_p10, %p2436_p4  ;;  %p2295_p1 = scmp.lt.s32.totalorder %s2293_s10, %s2287_s7 }
  0x30   : > { %797 = vperm.xlu1 %2260, %v719_v5   ;;  %787 = vperm.xlu0 %2259, %v717_v6   ;;  %v730_v30 = vld [vmem:[%s2482_s18 + $0x70] sm:$0xff]  ;;  %v251_v33 = vld [vmem:[%s2505_s23] sm:$0xff]  ;;  %v733_v35 = vld [vmem:[%s2482_s18 + $0x88] sm:$0xff] }
  0x31   : > { %2036 = vmatprep.subr.mxu0 %v326_v11  ;;  %2160 = vmatprep.subr.mxu1 %v326_v11  ;;  %v283_v34 = vld [vmem:[%s2505_s23 + $0x100] sm:$0xff]  ;;  %v252_v37 = vld [vmem:[%s2505_s23 + $0x8] sm:$0xff]  ;;  %v253_v39 = vld [vmem:[%s2505_s23 + $0x10] sm:$0xff]  ;;  %p2290_p13 = pneg %p2289_p11  ;;  %p2296_p2 = por %p2295_p1, %p2294_p0 }
  0x32   : > { %2037 = vmatpush3.msra.mxu0 %v326_v11  ;;  %2176 = vmatpush3.msra.mxu1 %v326_v11  ;;  %v732_v36 = vld [vmem:[%s2482_s18 + $0x80] sm:$0xff]  ;;  %v284_v38 = vld [vmem:[%s2505_s23 + $0x108] sm:$0xff]  ;;  %v285_v40 = vld [vmem:[%s2505_s23 + $0x110] sm:$0xff] }
  0x33   : > { %2038 = vmatprep.subr.mxu0 %v325_v12  ;;  %2161 = vmatprep.subr.mxu1 %v325_v12  ;;  %v735_v41 = vld [vmem:[%s2482_s18 + $0x98] sm:$0xff]  ;;  %v734_v42 = vld [vmem:[%s2482_s18 + $0x90] sm:$0xff]  ;;  %v255_v45 = vld [vmem:[%s2505_s23 + $0x20] sm:$0xff]  ;;  %p2297_p3 = pnand %p2296_p2, %p2290_p13 }
  0x34   : > { %807 = vperm.xlu1 %2260, %v721_v9   ;;  %802 = vperm.xlu0 %2259, %v720_v10   ;;  %v254_v43 = vld [vmem:[%s2505_s23 + $0x18] sm:$0xff]  ;;  %v287_v46 = vld [vmem:[%s2505_s23 + $0x120] sm:$0xff]  ;;  %v737_v47 = vld [vmem:[%s2482_s18 + $0xa8] sm:$0xff] }
  0x35   : > { %2039 = vmatpush3.msra.mxu0 %v325_v12  ;;  %2177 = vmatpush3.msra.mxu1 %v325_v12  ;;  %v286_v44 = vld [vmem:[%s2505_s23 + $0x118] sm:$0xff]  ;;  %v736_v48 = vld [vmem:[%s2482_s18 + $0xa0] sm:$0xff]  ;;  %v256_v49 = vld [vmem:[%s2505_s23 + $0x28] sm:$0xff] }
  0x36   : > { %2040 = vmatprep.subr.mxu0 %v324_v15  ;;  %2162 = vmatprep.subr.mxu1 %v324_v15  ;;  %v288_v50 = vld [vmem:[%s2505_s23 + $0x128] sm:$0xff]  ;;  %v257_v51 = vld [vmem:[%s2505_s23 + $0x30] sm:$0xff]  ;;  %v739_v53 = vld [vmem:[%s2482_s18 + $0xb8] sm:$0xff] }
  0x37   : > { %2041 = vmatpush3.msra.mxu0 %v324_v15  ;;  %2178 = vmatpush3.msra.mxu1 %v324_v15  ;;  %v289_v52 = vld [vmem:[%s2505_s23 + $0x130] sm:$0xff]  ;;  %v258_v55 = vld [vmem:[%s2505_s23 + $0x38] sm:$0xff]  ;;  %v259_v57 = vld [vmem:[%s2505_s23 + $0x40] sm:$0xff] }
  0x38   : > { %817 = vperm.xlu1 %2260, %v723_v13   ;;  %812 = vperm.xlu0 %2259, %v722_v14   ;;  %v738_v54 = vld [vmem:[%s2482_s18 + $0xb0] sm:$0xff]  ;;  %v290_v56 = vld [vmem:[%s2505_s23 + $0x138] sm:$0xff]  ;;  %v291_v58 = vld [vmem:[%s2505_s23 + $0x140] sm:$0xff] }
  0x39   : > { %2042 = vmatprep.subr.mxu0 %v323_v16  ;;  %2163 = vmatprep.subr.mxu1 %v323_v16  ;;  %v741_v59 = vld [vmem:[%s2482_s18 + $0xc8] sm:$0xff]  ;;  %v740_v60 = vld [vmem:[%s2482_s18 + $0xc0] sm:$0xff]  ;;  %v261_v63 = vld [vmem:[%s2505_s23 + $0x50] sm:$0xff] }
  0x3a   : > { %2043 = vmatpush3.msra.mxu0 %v323_v16  ;;  %2179 = vmatpush3.msra.mxu1 %v323_v16  ;;  %v260_v61 = vld [vmem:[%s2505_s23 + $0x48] sm:$0xff]  ;;  %v293_v0 = vld [vmem:[%s2505_s23 + $0x150] sm:$0xff]  ;;  %v743_v1 = vld [vmem:[%s2482_s18 + $0xd8] sm:$0xff] }
  0x3b   : > { %2044 = vmatprep.subr.mxu0 %v322_v19  ;;  %2164 = vmatprep.subr.mxu1 %v322_v19  ;;  %v292_v62 = vld [vmem:[%s2505_s23 + $0x148] sm:$0xff]  ;;  %v742_v2 = vld [vmem:[%s2482_s18 + $0xd0] sm:$0xff]  ;;  %v262_v3 = vld [vmem:[%s2505_s23 + $0x58] sm:$0xff] }
  0x3c   : > { %827 = vperm.xlu1 %2260, %v725_v17   ;;  %822 = vperm.xlu0 %2259, %v724_v18   ;;  %v294_v4 = vld [vmem:[%s2505_s23 + $0x158] sm:$0xff]  ;;  %v263_v5 = vld [vmem:[%s2505_s23 + $0x60] sm:$0xff]  ;;  %v745_v7 = vld [vmem:[%s2482_s18 + $0xe8] sm:$0xff] }
  0x3d   : > { %2045 = vmatpush3.msra.mxu0 %v322_v19  ;;  %2180 = vmatpush3.msra.mxu1 %v322_v19  ;;  %v295_v6 = vld [vmem:[%s2505_s23 + $0x160] sm:$0xff]  ;;  %v264_v9 = vld [vmem:[%s2505_s23 + $0x68] sm:$0xff]  ;;  %v265_v11 = vld [vmem:[%s2505_s23 + $0x70] sm:$0xff] }
  0x3e   : > { %2046 = vmatprep.subr.mxu0 %v321_v20  ;;  %2165 = vmatprep.subr.mxu1 %v321_v20  ;;  %v744_v8 = vld [vmem:[%s2482_s18 + $0xe0] sm:$0xff]  ;;  %v296_v10 = vld [vmem:[%s2505_s23 + $0x168] sm:$0xff]  ;;  %v297_v12 = vld [vmem:[%s2505_s23 + $0x170] sm:$0xff] }
  0x3f   : > { %2047 = vmatpush3.msra.mxu0 %v321_v20  ;;  %2181 = vmatpush3.msra.mxu1 %v321_v20  ;;  %v747_v13 = vld [vmem:[%s2482_s18 + $0xf8] sm:$0xff]  ;;  %v746_v14 = vld [vmem:[%s2482_s18 + $0xf0] sm:$0xff]  ;;  %v267_v17 = vld [vmem:[%s2505_s23 + $0x80] sm:$0xff] }
  0x40   : > { %837 = vperm.xlu1 %2260, %v727_v21   ;;  %832 = vperm.xlu0 %2259, %v726_v22   ;;  %v266_v15 = vld [vmem:[%s2505_s23 + $0x78] sm:$0xff]  ;;  %v299_v18 = vld [vmem:[%s2505_s23 + $0x180] sm:$0xff]  ;;  %v749_v19 = vld [vmem:[%s2482_s18 + $0x108] sm:$0xff] }
  0x41   : > { %2048 = vmatprep.subr.mxu0 %v320_v23  ;;  %2166 = vmatprep.subr.mxu1 %v320_v23  ;;  %v298_v16 = vld [vmem:[%s2505_s23 + $0x178] sm:$0xff]  ;;  %v748_v20 = vld [vmem:[%s2482_s18 + $0x100] sm:$0xff]  ;;  %v268_v21 = vld [vmem:[%s2505_s23 + $0x88] sm:$0xff] }
  0x42   : > { %2049 = vmatpush3.msra.mxu0 %v320_v23  ;;  %2182 = vmatpush3.msra.mxu1 %v320_v23  ;;  %v300_v22 = vld [vmem:[%s2505_s23 + $0x188] sm:$0xff]  ;;  %v269_v23 = vld [vmem:[%s2505_s23 + $0x90] sm:$0xff] }
  0x43   : > { %2050 = vmatprep.subr.mxu0 %v319_v24  ;;  %2167 = vmatprep.subr.mxu1 %v319_v24 }
  0x44   : > { %2051 = vmatpush3.msra.mxu0 %v319_v24  ;;  %2183 = vmatpush3.msra.mxu1 %v319_v24  ;;  %v301_v24 = vld [vmem:[%s2505_s23 + $0x190] sm:$0xff] }
  0x45   : > { %847 = vperm.xlu1 %2260, %v729_v25   ;;  %842 = vperm.xlu0 %2259, %v728_v26   ;;  %v751_v25 = vld [vmem:[%s2482_s18 + $0x118] sm:$0xff]  ;;  %v750_v26 = vld [vmem:[%s2482_s18 + $0x110] sm:$0xff] }
  0x46   : > { %2052 = vmatprep.subr.mxu0 %v318_v27  ;;  %2168 = vmatprep.subr.mxu1 %v318_v27 }
  0x47   : > { %2053 = vmatpush3.msra.mxu0 %v318_v27  ;;  %2184 = vmatpush3.msra.mxu1 %v318_v27  ;;  %v270_v27 = vld [vmem:[%s2505_s23 + $0x98] sm:$0xff] }
  0x48   : > { %2054 = vmatprep.subr.mxu0 %v317_v28  ;;  %2169 = vmatprep.subr.mxu1 %v317_v28 }
  0x49   : > { %2055 = vmatpush3.msra.mxu0 %v317_v28  ;;  %2185 = vmatpush3.msra.mxu1 %v317_v28  ;;  %v302_v28 = vld [vmem:[%s2505_s23 + $0x198] sm:$0xff] }
  0x4a   : > { %857 = vperm.xlu1 %2260, %v731_v29   ;;  %852 = vperm.xlu0 %2259, %v730_v30   ;;  %v271_v29 = vld [vmem:[%s2505_s23 + $0xa0] sm:$0xff] }
  0x4b   : > { %2056 = vmatprep.subr.mxu0 %v316_v31  ;;  %2170 = vmatprep.subr.mxu1 %v316_v31  ;;  %v303_v30 = vld [vmem:[%s2505_s23 + $0x1a0] sm:$0xff] }
  0x4c   : > { %2057 = vmatpush3.msra.mxu0 %v316_v31  ;;  %2186 = vmatpush3.msra.mxu1 %v316_v31  ;;  %v753_v31 = vld [vmem:[%s2482_s18 + $0x128] sm:$0xff] }
  0x4d   : > { %2058 = vmatprep.subr.mxu0 %v315_v32  ;;  %2171 = vmatprep.subr.mxu1 %v315_v32 }
  0x4e   : > { %2059 = vmatpush3.msra.mxu0 %v315_v32  ;;  %2187 = vmatpush3.msra.mxu1 %v315_v32  ;;  %v752_v32 = vld [vmem:[%s2482_s18 + $0x120] sm:$0xff] }
  0x4f   : > { %2060 = vmatprep.mubr.f32.mxu0 %v251_v33  ;;  %2108 = vmatprep.mubr.f32.mxu1 %v283_v34  ;;  %v272_v33 = vld [vmem:[%s2505_s23 + $0xa8] sm:$0xff] }
  0x50   : > { %867 = vperm.xlu1 %2260, %v733_v35   ;;  %862 = vperm.xlu0 %2259, %v732_v36   ;;  %v304_v34 = vld [vmem:[%s2505_s23 + $0x1a8] sm:$0xff]  ;;  %v273_v35 = vld [vmem:[%s2505_s23 + $0xb0] sm:$0xff] }
  0x51   : > { %2061 = vmatmul.mubr.f32.vlgmr.msra.gmra.mxu0 %v252_v37  ;;  %2109 = vmatmul.mubr.f32.vlgmr.msra.gmra.mxu1 %v284_v38  ;;  %v305_v36 = vld [vmem:[%s2505_s23 + $0x1b0] sm:$0xff]  ;;  %v755_v37 = vld [vmem:[%s2482_s18 + $0x138] sm:$0xff] }
  0x52   : > { %2063 = vmatprep.mubr.f32.mxu0 %v253_v39  ;;  %2111 = vmatprep.mubr.f32.mxu1 %v285_v40  ;;  %v754_v38 = vld [vmem:[%s2482_s18 + $0x130] sm:$0xff]  ;;  %v274_v39 = vld [vmem:[%s2505_s23 + $0xb8] sm:$0xff] }
  0x53   : > { %v306_v40 = vld [vmem:[%s2505_s23 + $0x1b8] sm:$0xff] }
  0x54   : > { %877 = vperm.xlu1 %2260, %v735_v41   ;;  %872 = vperm.xlu0 %2259, %v734_v42   ;;  %v275_v41 = vld [vmem:[%s2505_s23 + $0xc0] sm:$0xff] }
  0x55   : > { %2064 = vmatmul.mubr.f32.gmra.mxu0 %v254_v43  ;;  %2112 = vmatmul.mubr.f32.gmra.mxu1 %v286_v44  ;;  %v307_v42 = vld [vmem:[%s2505_s23 + $0x1c0] sm:$0xff]  ;;  %v757_v43 = vld [vmem:[%s2482_s18 + $0x148] sm:$0xff] }
  0x56   : > { %2066 = vmatprep.mubr.f32.mxu0 %v255_v45  ;;  %2114 = vmatprep.mubr.f32.mxu1 %v287_v46  ;;  %v756_v44 = vld [vmem:[%s2482_s18 + $0x140] sm:$0xff]  ;;  %v276_v45 = vld [vmem:[%s2505_s23 + $0xc8] sm:$0xff] }
  0x57   : > { %v308_v46 = vld [vmem:[%s2505_s23 + $0x1c8] sm:$0xff] }
  0x58   : > { %887 = vperm.xlu1 %2260, %v737_v47   ;;  %882 = vperm.xlu0 %2259, %v736_v48   ;;  %v277_v47 = vld [vmem:[%s2505_s23 + $0xd0] sm:$0xff] }
  0x59   : > { %2067 = vmatmul.mubr.f32.gmra.mxu0 %v256_v49  ;;  %2115 = vmatmul.mubr.f32.gmra.mxu1 %v288_v50  ;;  %v309_v48 = vld [vmem:[%s2505_s23 + $0x1d0] sm:$0xff]  ;;  %v759_v49 = vld [vmem:[%s2482_s18 + $0x158] sm:$0xff] }
  0x5a   : > { %2069 = vmatprep.mubr.f32.mxu0 %v257_v51  ;;  %2117 = vmatprep.mubr.f32.mxu1 %v289_v52  ;;  %v758_v50 = vld [vmem:[%s2482_s18 + $0x150] sm:$0xff]  ;;  %v278_v51 = vld [vmem:[%s2505_s23 + $0xd8] sm:$0xff] }
  0x5b   : > { %v310_v52 = vld [vmem:[%s2505_s23 + $0x1d8] sm:$0xff] }
  0x5c   : > { %897 = vperm.xlu1 %2260, %v739_v53   ;;  %892 = vperm.xlu0 %2259, %v738_v54   ;;  %v279_v53 = vld [vmem:[%s2505_s23 + $0xe0] sm:$0xff] }
  0x5d   : > { %2070 = vmatmul.mubr.f32.gmra.mxu0 %v258_v55  ;;  %2118 = vmatmul.mubr.f32.gmra.mxu1 %v290_v56  ;;  %v311_v54 = vld [vmem:[%s2505_s23 + $0x1e0] sm:$0xff]  ;;  %v761_v55 = vld [vmem:[%s2482_s18 + $0x168] sm:$0xff] }
  0x5e   : > { %2072 = vmatprep.mubr.f32.mxu0 %v259_v57  ;;  %2120 = vmatprep.mubr.f32.mxu1 %v291_v58  ;;  %v760_v56 = vld [vmem:[%s2482_s18 + $0x160] sm:$0xff]  ;;  %v280_v57 = vld [vmem:[%s2505_s23 + $0xe8] sm:$0xff] }
  0x5f   : > { %v312_v58 = vld [vmem:[%s2505_s23 + $0x1e8] sm:$0xff] }
  0x60   : > { %907 = vperm.xlu1 %2260, %v741_v59   ;;  %902 = vperm.xlu0 %2259, %v740_v60   ;;  %v281_v59 = vld [vmem:[%s2505_s23 + $0xf0] sm:$0xff] }
  0x61   : > { %2073 = vmatmul.mubr.f32.gmra.mxu0 %v260_v61  ;;  %2121 = vmatmul.mubr.f32.gmra.mxu1 %v292_v62  ;;  %v313_v60 = vld [vmem:[%s2505_s23 + $0x1f0] sm:$0xff]  ;;  %v763_v61 = vld [vmem:[%s2482_s18 + $0x178] sm:$0xff] }
  0x62   : > { %2075 = vmatprep.mubr.f32.mxu0 %v261_v63  ;;  %2123 = vmatprep.mubr.f32.mxu1 %v293_v0  ;;  %v762_v62 = vld [vmem:[%s2482_s18 + $0x170] sm:$0xff]  ;;  %v282_v63 = vld [vmem:[%s2505_s23 + $0xf8] sm:$0xff] }
  0x63   : > { %v314_v0 = vld [vmem:[%s2505_s23 + $0x1f8] sm:$0xff] }
  0x64   : > { %917 = vperm.xlu1 %2260, %v743_v1   ;;  %912 = vperm.xlu0 %2259, %v742_v2   ;;  %v765_v1 = vld [vmem:[%s2482_s18 + $0x188] sm:$0xff]  ;;  %v764_v2 = vld [vmem:[%s2482_s18 + $0x180] sm:$0xff] }
  0x65   : > { %2076 = vmatmul.mubr.f32.gmra.mxu0 %v262_v3  ;;  %2124 = vmatmul.mubr.f32.gmra.mxu1 %v294_v4  ;;  %v767_v3 = vld [vmem:[%s2482_s18 + $0x198] sm:$0xff]  ;;  %v766_v4 = vld [vmem:[%s2482_s18 + $0x190] sm:$0xff] }
  0x66   : > { %2078 = vmatprep.mubr.f32.mxu0 %v263_v5  ;;  %2126 = vmatprep.mubr.f32.mxu1 %v295_v6  ;;  %v769_v5 = vld [vmem:[%s2482_s18 + $0x1a8] sm:$0xff]  ;;  %v768_v6 = vld [vmem:[%s2482_s18 + $0x1a0] sm:$0xff] }
  0x68   : > { %927 = vperm.xlu1 %2260, %v745_v7   ;;  %922 = vperm.xlu0 %2259, %v744_v8   ;;  %v771_v7 = vld [vmem:[%s2482_s18 + $0x1b8] sm:$0xff]  ;;  %v770_v8 = vld [vmem:[%s2482_s18 + $0x1b0] sm:$0xff] }
  0x69   : > { %2079 = vmatmul.mubr.f32.gmra.mxu0 %v264_v9  ;;  %2127 = vmatmul.mubr.f32.gmra.mxu1 %v296_v10  ;;  %v773_v9 = vld [vmem:[%s2482_s18 + $0x1c8] sm:$0xff]  ;;  %v772_v10 = vld [vmem:[%s2482_s18 + $0x1c0] sm:$0xff] }
  0x6a   : > { %2081 = vmatprep.mubr.f32.mxu0 %v265_v11  ;;  %2129 = vmatprep.mubr.f32.mxu1 %v297_v12  ;;  %v775_v11 = vld [vmem:[%s2482_s18 + $0x1d8] sm:$0xff]  ;;  %v774_v12 = vld [vmem:[%s2482_s18 + $0x1d0] sm:$0xff] }
  0x6c   : > { %937 = vperm.xlu1 %2260, %v747_v13   ;;  %932 = vperm.xlu0 %2259, %v746_v14  }
  0x6d   : > { %2082 = vmatmul.mubr.f32.gmra.mxu0 %v266_v15  ;;  %2130 = vmatmul.mubr.f32.gmra.mxu1 %v298_v16  ;;  %v777_v15 = vld [vmem:[%s2482_s18 + $0x1e8] sm:$0xff]  ;;  %v776_v16 = vld [vmem:[%s2482_s18 + $0x1e0] sm:$0xff] }
  0x6e   : > { %2084 = vmatprep.mubr.f32.mxu0 %v267_v17  ;;  %2132 = vmatprep.mubr.f32.mxu1 %v299_v18 }
  0x70   : > { %947 = vperm.xlu1 %2260, %v749_v19   ;;  %942 = vperm.xlu0 %2259, %v748_v20   ;;  %v779_v19 = vld [vmem:[%s2482_s18 + $0x1f8] sm:$0xff]  ;;  %v778_v20 = vld [vmem:[%s2482_s18 + $0x1f0] sm:$0xff] }
  0x71   : > { %2085 = vmatmul.mubr.f32.gmra.mxu0 %v268_v21  ;;  %2133 = vmatmul.mubr.f32.gmra.mxu1 %v300_v22 }
  0x72   : > { %2087 = vmatprep.mubr.f32.mxu0 %v269_v23  ;;  %2135 = vmatprep.mubr.f32.mxu1 %v301_v24 }
  0x74   : > { %957 = vperm.xlu1 %2260, %v751_v25   ;;  %952 = vperm.xlu0 %2259, %v750_v26  }
  0x75   : > { %2088 = vmatmul.mubr.f32.gmra.mxu0 %v270_v27  ;;  %2136 = vmatmul.mubr.f32.gmra.mxu1 %v302_v28 }
  0x76   : > { %2090 = vmatprep.mubr.f32.mxu0 %v271_v29  ;;  %2138 = vmatprep.mubr.f32.mxu1 %v303_v30 }
  0x78   : > { %967 = vperm.xlu1 %2260, %v753_v31   ;;  %962 = vperm.xlu0 %2259, %v752_v32  }
  0x79   : > { %2091 = vmatmul.mubr.f32.gmra.mxu0 %v272_v33  ;;  %2139 = vmatmul.mubr.f32.gmra.mxu1 %v304_v34 }
  0x7a   : > { %2093 = vmatprep.mubr.f32.mxu0 %v273_v35  ;;  %2141 = vmatprep.mubr.f32.mxu1 %v305_v36 }
  0x7c   : > { %977 = vperm.xlu1 %2260, %v755_v37   ;;  %972 = vperm.xlu0 %2259, %v754_v38  }
  0x7d   : > { %2094 = vmatmul.mubr.f32.gmra.mxu0 %v274_v39  ;;  %2142 = vmatmul.mubr.f32.gmra.mxu1 %v306_v40 }
  0x7e   : > { %2096 = vmatprep.mubr.f32.mxu0 %v275_v41  ;;  %2144 = vmatprep.mubr.f32.mxu1 %v307_v42 }
  0x80   : > { %987 = vperm.xlu1 %2260, %v757_v43   ;;  %982 = vperm.xlu0 %2259, %v756_v44  }
  0x81   : > { %2097 = vmatmul.mubr.f32.gmra.mxu0 %v276_v45  ;;  %2145 = vmatmul.mubr.f32.gmra.mxu1 %v308_v46 }
  0x82   : > { %2099 = vmatprep.mubr.f32.mxu0 %v277_v47  ;;  %2147 = vmatprep.mubr.f32.mxu1 %v309_v48 }
  0x84   : > { %997 = vperm.xlu1 %2260, %v759_v49   ;;  %992 = vperm.xlu0 %2259, %v758_v50  }
  0x85   : > { %2100 = vmatmul.mubr.f32.gmra.mxu0 %v278_v51  ;;  %2148 = vmatmul.mubr.f32.gmra.mxu1 %v310_v52 }
  0x86   : > { %2102 = vmatprep.mubr.f32.mxu0 %v279_v53  ;;  %2150 = vmatprep.mubr.f32.mxu1 %v311_v54 }
  0x88   : > { %1007 = vperm.xlu1 %2260, %v761_v55   ;;  %1002 = vperm.xlu0 %2259, %v760_v56  }
  0x89   : > { %2103 = vmatmul.mubr.f32.gmra.mxu0 %v280_v57  ;;  %2151 = vmatmul.mubr.f32.gmra.mxu1 %v312_v58 }
  0x8a   : > { %2105 = vmatprep.mubr.f32.mxu0 %v281_v59  ;;  %2153 = vmatprep.mubr.f32.mxu1 %v313_v60 }
  0x8c   : > { %1017 = vperm.xlu1 %2260, %v763_v61   ;;  %1012 = vperm.xlu0 %2259, %v762_v62  }
  0x8d   : > { %2106 = vmatmul.mubr.f32.gmra.mxu0 %v282_v63  ;;  %2154 = vmatmul.mubr.f32.gmra.mxu1 %v314_v0 }
  0x90   : > { %1027 = vperm.xlu1 %2260, %v765_v1   ;;  %1022 = vperm.xlu0 %2259, %v764_v2  }
  0x94   : > { %1037 = vperm.xlu1 %2260, %v767_v3   ;;  %1032 = vperm.xlu0 %2259, %v766_v4  }
  0x98   : > { %1047 = vperm.xlu1 %2260, %v769_v5   ;;  %1042 = vperm.xlu0 %2259, %v768_v6  }
  0x9c   : > { %1057 = vperm.xlu1 %2260, %v771_v7   ;;  %1052 = vperm.xlu0 %2259, %v770_v8  }
  0xa0   : > { %1067 = vperm.xlu1 %2260, %v773_v9   ;;  %1062 = vperm.xlu0 %2259, %v772_v10  }
  0xa4   : > { %1077 = vperm.xlu1 %2260, %v775_v11   ;;  %1072 = vperm.xlu0 %2259, %v774_v12  }
  0xa7   : > { %v2615_v13 = vpop.permute.xlu1 %792  ;;  %v783_v14 = vpop.permute.xlu0 %782 }
  0xa8   : > { %1087 = vperm.xlu1 %2260, %v777_v15   ;;  %1082 = vperm.xlu0 %2259, %v776_v16  }
  0xab   : > { %v2619_v17 = vpop.permute.xlu1 %797  ;;  %v788_v18 = vpop.permute.xlu0 %787 }
  0xac   : > { %1097 = vperm.xlu1 %2260, %v779_v19   ;;  %1092 = vperm.xlu0 %2259, %v778_v20  }
  0xaf   : > { %v2623_v21 = vpop.permute.xlu1 %807  ;;  %v2625_v22 = vpop.permute.xlu0 %802 }
  0xb3   : > { %v2627_v23 = vpop.permute.xlu1 %817  ;;  %v2629_v24 = vpop.permute.xlu0 %812 }
  0xb7   : > { %v2631_v25 = vpop.permute.xlu1 %827  ;;  %v2633_v26 = vpop.permute.xlu0 %822 }
  0xbb   : > { %v2635_v27 = vpop.permute.xlu1 %837  ;;  %v2637_v28 = vpop.permute.xlu0 %832 }
  0xc0   : > { %v2639_v29 = vpop.permute.xlu1 %847  ;;  %v2641_v30 = vpop.permute.xlu0 %842 }
  0xc5   : > { %v2643_v31 = vpop.permute.xlu1 %857  ;;  %v2645_v32 = vpop.permute.xlu0 %852 }
  0xcb   : > { %v2647_v33 = vpop.permute.xlu1 %867  ;;  %v2649_v34 = vpop.permute.xlu0 %862 }
  0xcf   : > { %v2651_v35 = vpop.permute.xlu1 %877  ;;  %v2653_v36 = vpop.permute.xlu0 %872 }
  0xd3   : > { %v2655_v37 = vpop.permute.xlu1 %887  ;;  %v2657_v38 = vpop.permute.xlu0 %882 }
  0xd7   : > { %v2659_v39 = vpop.permute.xlu1 %897  ;;  %v2661_v40 = vpop.permute.xlu0 %892 }
  0xdb   : > { %v2663_v41 = vpop.permute.xlu1 %907  ;;  %v2665_v42 = vpop.permute.xlu0 %902 }
  0xdf   : > { %v2667_v43 = vpop.permute.xlu1 %917  ;;  %v2669_v44 = vpop.permute.xlu0 %912 }
  0xe3   : > { %v2671_v45 = vpop.permute.xlu1 %927  ;;  %v2673_v46 = vpop.permute.xlu0 %922 }
  0xe7   : > { %v2675_v47 = vpop.permute.xlu1 %937  ;;  %v2677_v48 = vpop.permute.xlu0 %932 }
  0xeb   : > { %v948_v49 = vpop.permute.xlu1 %947  ;;  %v943_v50 = vpop.permute.xlu0 %942 }
  0xef   : > { %v958_v51 = vpop.permute.xlu1 %957  ;;  %v953_v52 = vpop.permute.xlu0 %952 }
  0xf3   : > { %v968_v53 = vpop.permute.xlu1 %967  ;;  %v963_v54 = vpop.permute.xlu0 %962 }
  0xf7   : > { %v978_v55 = vpop.permute.xlu1 %977  ;;  %v973_v56 = vpop.permute.xlu0 %972 }
  0xfb   : > { %v2679_v57 = vpop.permute.xlu1 %987  ;;  %v2681_v58 = vpop.permute.xlu0 %982 }
  0xff   : > { %v2684_v61 = vpop.permute.xlu1 %997  ;;  %v2686_v62 = vpop.permute.xlu0 %992 }
 0x103   : > { %v2690_v11 = vpop.permute.xlu1 %1007  ;;  %v2692_v12 = vpop.permute.xlu0 %1002 }
 0x111   : > { %v2062_v59 = vpop.f32.mrf.mxu0  ;;  %v2110_v60 = vpop.f32.mrf.mxu1 }
 0x112   : > { %v1101_v1 = vmul.f32 %v2062_v59, %v788_v18  ;;  %v1133_v2 = vmul.f32 %v2110_v60, %v948_v49 }
 0x113   : > { %v397_v63 = vpop.f32.mrf.mxu0  ;;  %v557_v0 = vpop.f32.mrf.mxu1 }
 0x114   : > { %v1100_v3 = vmul.f32 %v783_v14, %v397_v63  ;;  %v1132_v4 = vmul.f32 %v943_v50, %v557_v0 }
 0x115   : > { %v2065_v5 = vpop.f32.mrf.mxu0  ;;  %v2113_v6 = vpop.f32.mrf.mxu1 }
 0x116   : > { %v1760_v7 = vpack.c.bf16 %v1101_v1, %v1100_v3  ;;  %v1840_v8 = vpack.c.bf16 %v1133_v2, %v1132_v4  ;;  %v1103_v14 = vmul.f32 %v2065_v5, %v2619_v17  ;;  %v1135_v15 = vmul.f32 %v2113_v6, %v958_v51 }
 0x117   : > { %v407_v9 = vpop.f32.mrf.mxu0  ;;  %v567_v10 = vpop.f32.mrf.mxu1 }
 0x118   : > { %1761 = vst [vmem:[%s2694_s28] sm:$0xff] %v1760_v7   ;;  %1932 = vst [vmem:[%s2694_s28 + $0x80] sm:$0xff] %v1840_v8   ;;  %v1102_v16 = vmul.f32 %v2615_v13, %v407_v9  ;;  %v1134_v18 = vmul.f32 %v953_v52, %v567_v10  ;;  %v2704_v13 = vpop.permute.xlu1 %1017  ;;  %v2706_v52 = vpop.permute.xlu0 %1012 }
 0x119   : > { %v2068_v19 = vpop.f32.mrf.mxu0  ;;  %v2116_v20 = vpop.f32.mrf.mxu1 }
 0x11a   : > { %v1765_v49 = vpack.c.bf16 %v1103_v14, %v1102_v16  ;;  %v1845_v50 = vpack.c.bf16 %v1135_v15, %v1134_v18  ;;  %v1105_v63 = vmul.f32 %v2068_v19, %v2623_v21  ;;  %v1137_v0 = vmul.f32 %v2116_v20, %v968_v53 }
 0x11b   : > { %v417_v59 = vpop.f32.mrf.mxu0  ;;  %v577_v60 = vpop.f32.mrf.mxu1 }
 0x11c   : > { %1917 = vst [vmem:[%s2694_s28 + $0x8] sm:$0xff] %v1765_v49   ;;  %1933 = vst [vmem:[%s2694_s28 + $0x88] sm:$0xff] %v1845_v50   ;;  %v1104_v1 = vmul.f32 %v2625_v22, %v417_v59  ;;  %v1136_v17 = vmul.f32 %v963_v54, %v577_v60  ;;  %v1028_v16 = vpop.permute.xlu1 %1027  ;;  %v1023_v18 = vpop.permute.xlu0 %1022 }
 0x11d   : > { %v2071_v51 = vpop.f32.mrf.mxu0  ;;  %v2119_v2 = vpop.f32.mrf.mxu1 }
 0x11e   : > { %v1770_v3 = vpack.c.bf16 %v1105_v63, %v1104_v1  ;;  %v1850_v4 = vpack.c.bf16 %v1137_v0, %v1136_v17  ;;  %v1107_v21 = vmul.f32 %v2071_v51, %v2627_v23  ;;  %v1139_v53 = vmul.f32 %v2119_v2, %v978_v55 }
 0x11f   : > { %v427_v5 = vpop.f32.mrf.mxu0  ;;  %v587_v6 = vpop.f32.mrf.mxu1 }
 0x120   : > { %1918 = vst [vmem:[%s2694_s28 + $0x10] sm:$0xff] %v1770_v3   ;;  %1934 = vst [vmem:[%s2694_s28 + $0x90] sm:$0xff] %v1850_v4   ;;  %v1106_v22 = vmul.f32 %v2629_v24, %v427_v5  ;;  %v1138_v54 = vmul.f32 %v973_v56, %v587_v6  ;;  %v1038_v1 = vpop.permute.xlu1 %1037  ;;  %v1033_v17 = vpop.permute.xlu0 %1032 }
 0x121   : > { %v2074_v7 = vpop.f32.mrf.mxu0  ;;  %v2122_v8 = vpop.f32.mrf.mxu1 }
 0x122   : > { %v1775_v9 = vpack.c.bf16 %v1107_v21, %v1106_v22  ;;  %v1855_v10 = vpack.c.bf16 %v1139_v53, %v1138_v54  ;;  %v1109_v19 = vmul.f32 %v2074_v7, %v2631_v25  ;;  %v1141_v23 = vmul.f32 %v2122_v8, %v2679_v57 }
 0x123   : > { %v437_v14 = vpop.f32.mrf.mxu0  ;;  %v597_v15 = vpop.f32.mrf.mxu1 }
 0x124   : > { %1919 = vst [vmem:[%s2694_s28 + $0x18] sm:$0xff] %v1775_v9   ;;  %1935 = vst [vmem:[%s2694_s28 + $0x98] sm:$0xff] %v1855_v10   ;;  %v1108_v55 = vmul.f32 %v2633_v26, %v437_v14  ;;  %v1140_v24 = vmul.f32 %v2681_v58, %v597_v15  ;;  %v1048_v7 = vpop.permute.xlu1 %1047  ;;  %v1043_v8 = vpop.permute.xlu0 %1042 }
 0x125   : > { %v2077_v56 = vpop.f32.mrf.mxu0  ;;  %v2125_v20 = vpop.f32.mrf.mxu1 }
 0x126   : > { %v1780_v49 = vpack.c.bf16 %v1109_v19, %v1108_v55  ;;  %v1860_v50 = vpack.c.bf16 %v1141_v23, %v1140_v24  ;;  %v1111_v63 = vmul.f32 %v2077_v56, %v2635_v27  ;;  %v1143_v25 = vmul.f32 %v2125_v20, %v2684_v61 }
 0x127   : > { %v447_v59 = vpop.f32.mrf.mxu0  ;;  %v607_v60 = vpop.f32.mrf.mxu1 }
 0x128   : > { %1920 = vst [vmem:[%s2694_s28 + $0x20] sm:$0xff] %v1780_v49   ;;  %1936 = vst [vmem:[%s2694_s28 + $0xa0] sm:$0xff] %v1860_v50   ;;  %v1110_v57 = vmul.f32 %v2637_v28, %v447_v59  ;;  %v1142_v26 = vmul.f32 %v2686_v62, %v607_v60  ;;  %v1058_v20 = vpop.permute.xlu1 %1057 }
 0x129   : > { %v2080_v0 = vpop.f32.mrf.mxu0  ;;  %v2128_v58 = vpop.f32.mrf.mxu1 }
 0x12a   : > { %v1785_v51 = vpack.c.bf16 %v1111_v63, %v1110_v57  ;;  %v1865_v2 = vpack.c.bf16 %v1143_v25, %v1142_v26  ;;  %v1113_v27 = vmul.f32 %v2080_v0, %v2639_v29  ;;  %v1145_v61 = vmul.f32 %v2128_v58, %v2690_v11 }
 0x12b   : > { %v457_v3 = vpop.f32.mrf.mxu0  ;;  %v617_v4 = vpop.f32.mrf.mxu1 }
 0x12c   : > { %1921 = vst [vmem:[%s2694_s28 + $0x28] sm:$0xff] %v1785_v51   ;;  %1937 = vst [vmem:[%s2694_s28 + $0xa8] sm:$0xff] %v1865_v2   ;;  %v1112_v28 = vmul.f32 %v2641_v30, %v457_v3  ;;  %v1144_v62 = vmul.f32 %v2692_v12, %v617_v4  ;;  %v1068_v51 = vpop.permute.xlu1 %1067 }
 0x12d   : > { %v2083_v5 = vpop.f32.mrf.mxu0  ;;  %v2131_v6 = vpop.f32.mrf.mxu1 }
 0x12e   : > { %v1790_v21 = vpack.c.bf16 %v1113_v27, %v1112_v28  ;;  %v1870_v53 = vpack.c.bf16 %v1145_v61, %v1144_v62  ;;  %v1115_v29 = vmul.f32 %v2083_v5, %v2643_v31  ;;  %v1147_v11 = vmul.f32 %v2131_v6, %v2704_v13 }
 0x12f   : > { %v467_v22 = vpop.f32.mrf.mxu0  ;;  %v627_v54 = vpop.f32.mrf.mxu1 }
 0x130   : > { %1922 = vst [vmem:[%s2694_s28 + $0x30] sm:$0xff] %v1790_v21   ;;  %1938 = vst [vmem:[%s2694_s28 + $0xb0] sm:$0xff] %v1870_v53   ;;  %v1114_v30 = vmul.f32 %v2645_v32, %v467_v22  ;;  %v1146_v12 = vmul.f32 %v2706_v52, %v627_v54  ;;  %v1053_v52 = vpop.permute.xlu0 %1052 }
 0x131   : > { %v2086_v9 = vpop.f32.mrf.mxu0  ;;  %v2134_v10 = vpop.f32.mrf.mxu1 }
 0x132   : > { %v1795_v14 = vpack.c.bf16 %v1115_v29, %v1114_v30  ;;  %v1875_v15 = vpack.c.bf16 %v1147_v11, %v1146_v12  ;;  %v1117_v55 = vmul.f32 %v2086_v9, %v2647_v33  ;;  %v1149_v24 = vmul.f32 %v2134_v10, %v1028_v16 }
 0x133   : > { %v477_v19 = vpop.f32.mrf.mxu0  ;;  %v637_v23 = vpop.f32.mrf.mxu1 }
 0x134   : > { %1923 = vst [vmem:[%s2694_s28 + $0x38] sm:$0xff] %v1795_v14   ;;  %1939 = vst [vmem:[%s2694_s28 + $0xb8] sm:$0xff] %v1875_v15   ;;  %v1116_v31 = vmul.f32 %v2649_v34, %v477_v19  ;;  %v1148_v13 = vmul.f32 %v1023_v18, %v637_v23  ;;  %v1063_v2 = vpop.permute.xlu0 %1062 }
 0x135   : > { %v2089_v56 = vpop.f32.mrf.mxu0  ;;  %v2137_v32 = vpop.f32.mrf.mxu1 }
 0x136   : > { %v1800_v49 = vpack.c.bf16 %v1117_v55, %v1116_v31  ;;  %v1880_v50 = vpack.c.bf16 %v1149_v24, %v1148_v13  ;;  %v1119_v63 = vmul.f32 %v2089_v56, %v2651_v35  ;;  %v1151_v25 = vmul.f32 %v2137_v32, %v1038_v1 }
 0x137   : > { %v487_v59 = vpop.f32.mrf.mxu0  ;;  %v647_v60 = vpop.f32.mrf.mxu1 }
 0x138   : > { %1924 = vst [vmem:[%s2694_s28 + $0x40] sm:$0xff] %v1800_v49   ;;  %1940 = vst [vmem:[%s2694_s28 + $0xc0] sm:$0xff] %v1880_v50   ;;  %v1118_v33 = vmul.f32 %v2653_v36, %v487_v59  ;;  %v1150_v16 = vmul.f32 %v1033_v17, %v647_v60  ;;  %v1073_v54 = vpop.permute.xlu0 %1072 }
 0x139   : > { %v2092_v34 = vpop.f32.mrf.mxu0  ;;  %v2140_v18 = vpop.f32.mrf.mxu1 }
 0x13a   : > { %v1805_v57 = vpack.c.bf16 %v1119_v63, %v1118_v33  ;;  %v1885_v26 = vpack.c.bf16 %v1151_v25, %v1150_v16  ;;  %v1121_v3 = vmul.f32 %v2092_v34, %v2655_v37  ;;  %v1153_v4 = vmul.f32 %v2140_v18, %v1048_v7 }
 0x13b   : > { %v497_v0 = vpop.f32.mrf.mxu0  ;;  %v657_v58 = vpop.f32.mrf.mxu1 }
 0x13c   : > { %1925 = vst [vmem:[%s2694_s28 + $0x48] sm:$0xff] %v1805_v57   ;;  %1941 = vst [vmem:[%s2694_s28 + $0xc8] sm:$0xff] %v1885_v26   ;;  %v1120_v35 = vmul.f32 %v2657_v38, %v497_v0  ;;  %v1152_v1 = vmul.f32 %v1043_v8, %v657_v58  ;;  %v1078_v38 = vpop.permute.xlu1 %1077  ;;  %v1083_v24 = vpop.permute.xlu0 %1082 }
 0x13d   : > { %v2095_v36 = vpop.f32.mrf.mxu0  ;;  %v2143_v17 = vpop.f32.mrf.mxu1 }
 0x13e   : > { %v1810_v27 = vpack.c.bf16 %v1121_v3, %v1120_v35  ;;  %v1890_v61 = vpack.c.bf16 %v1153_v4, %v1152_v1  ;;  %v1123_v5 = vmul.f32 %v2095_v36, %v2659_v39  ;;  %v1155_v6 = vmul.f32 %v2143_v17, %v1058_v20 }
 0x13f   : > { %v507_v28 = vpop.f32.mrf.mxu0  ;;  %v667_v62 = vpop.f32.mrf.mxu1 }
 0x140   : > { %1926 = vst [vmem:[%s2694_s28 + $0x50] sm:$0xff] %v1810_v27   ;;  %1942 = vst [vmem:[%s2694_s28 + $0xd0] sm:$0xff] %v1890_v61   ;;  %v1122_v21 = vmul.f32 %v2661_v40, %v507_v28  ;;  %v1154_v37 = vmul.f32 %v1053_v52, %v667_v62  ;;  %v1088_v55 = vpop.permute.xlu1 %1087  ;;  %v1093_v16 = vpop.permute.xlu0 %1092 }
 0x141   : > { %v2098_v53 = vpop.f32.mrf.mxu0  ;;  %v2146_v22 = vpop.f32.mrf.mxu1 }
 0x142   : > { %v1815_v7 = vpack.c.bf16 %v1123_v5, %v1122_v21  ;;  %v1895_v8 = vpack.c.bf16 %v1155_v6, %v1154_v37  ;;  %v1125_v30 = vmul.f32 %v2098_v53, %v2663_v41  ;;  %v1157_v12 = vmul.f32 %v2146_v22, %v1068_v51 }
 0x143   : > { %v517_v29 = vpop.f32.mrf.mxu0  ;;  %v677_v11 = vpop.f32.mrf.mxu1 }
 0x144   : > { %1927 = vst [vmem:[%s2694_s28 + $0x58] sm:$0xff] %v1815_v7   ;;  %1943 = vst [vmem:[%s2694_s28 + $0xd8] sm:$0xff] %v1895_v8   ;;  %v1124_v39 = vmul.f32 %v2665_v42, %v517_v29  ;;  %v1156_v9 = vmul.f32 %v1063_v2, %v677_v11  ;;  %v1098_v33 = vpop.permute.xlu1 %1097 }
 0x145   : > { %v2101_v40 = vpop.f32.mrf.mxu0  ;;  %v2149_v10 = vpop.f32.mrf.mxu1 }
 0x146   : > { %v1820_v14 = vpack.c.bf16 %v1125_v30, %v1124_v39  ;;  %v1900_v15 = vpack.c.bf16 %v1157_v12, %v1156_v9  ;;  %v1127_v31 = vmul.f32 %v2101_v40, %v2667_v43  ;;  %v1159_v13 = vmul.f32 %v2149_v10, %v1078_v38 }
 0x147   : > { %v527_v19 = vpop.f32.mrf.mxu0  ;;  %v687_v23 = vpop.f32.mrf.mxu1 }
 0x148   : > { %1928 = vst [vmem:[%s2694_s28 + $0x60] sm:$0xff] %v1820_v14   ;;  %1944 = vst [vmem:[%s2694_s28 + $0xe0] sm:$0xff] %v1900_v15   ;;  %v1126_v41 = vmul.f32 %v2669_v44, %v527_v19  ;;  %v1158_v56 = vmul.f32 %v1073_v54, %v687_v23 }
 0x149   : > { %v2104_v42 = vpop.f32.mrf.mxu0  ;;  %v2152_v32 = vpop.f32.mrf.mxu1 }
 0x14a   : > { %v1825_v20 = vpack.c.bf16 %v1127_v31, %v1126_v41  ;;  %v1905_v52 = vpack.c.bf16 %v1159_v13, %v1158_v56  ;;  %v1129_v59 = vmul.f32 %v2104_v42, %v2671_v45  ;;  %v1161_v60 = vmul.f32 %v2152_v32, %v1088_v55 }
 0x14b   : > { %v537_v49 = vpop.f32.mrf.mxu0  ;;  %v697_v50 = vpop.f32.mrf.mxu1 }
 0x14c   : > { %1929 = vst [vmem:[%s2694_s28 + $0x68] sm:$0xff] %v1825_v20   ;;  %1945 = vst [vmem:[%s2694_s28 + $0xe8] sm:$0xff] %v1905_v52   ;;  %v1128_v43 = vmul.f32 %v2673_v46, %v537_v49  ;;  %v1160_v63 = vmul.f32 %v1083_v24, %v697_v50 }
 0x14d   : > { %v2107_v44 = vpop.f32.mrf.mxu0  ;;  %v2155_v25 = vpop.f32.mrf.mxu1 }
 0x14e   : > { %v1830_v34 = vpack.c.bf16 %v1129_v59, %v1128_v43  ;;  %v1910_v18 = vpack.c.bf16 %v1161_v60, %v1160_v63  ;;  %v1131_v45 = vmul.f32 %v2107_v44, %v2675_v47  ;;  %v1163_v46 = vmul.f32 %v2155_v25, %v1098_v33 }
 0x14f   : > { %v547_v57 = vpop.f32.mrf.mxu0  ;;  %v707_v26 = vpop.f32.mrf.mxu1 }
 0x150   : > { %1930 = vst [vmem:[%s2694_s28 + $0x70] sm:$0xff] %v1830_v34   ;;  %1946 = vst [vmem:[%s2694_s28 + $0xf0] sm:$0xff] %v1910_v18   ;;  %v1130_v0 = vmul.f32 %v2677_v48, %v547_v57  ;;  %v1162_v58 = vmul.f32 %v1093_v16, %v707_v26 }
 0x152   : > { %v1835_v51 = vpack.c.bf16 %v1131_v45, %v1130_v0  ;;  %v1915_v2 = vpack.c.bf16 %v1163_v46, %v1162_v58 }
 0x154   : > { %1931 = vst [vmem:[%s2694_s28 + $0x78] sm:$0xff] %v1835_v51   ;;  %1947 = vst [vmem:[%s2694_s28 + $0xf8] sm:$0xff] %v1915_v2  }
 0x155   : > { %2300 = shalt.err (!%p2297_p3)
}
 0x156   : > { %s2301_s11 = scalar_lea.hbm %s2773_s6, 4096  ;;  %s2305_s21 = scalar_lea.hbm %s2829_s3, 8192 }
 0x157   : > { %p2302_p5 = scmp.ne.s32.totalorder %s2773_s6, %s2301_s11  ;;  %p2306_p9 = scmp.lt.s32.totalorder %s2773_s6, %s2829_s3 }
 0x158   : > { %p2307_p12 = scmp.lt.s32.totalorder %s2305_s21, %s2301_s11 }
 0x159   : > { %p2303_p6 = pnand %p2302_p5, %p2436_p4 }
 0x15a   : > { %p2308_p10 = por %p2307_p12, %p2306_p9 }
 0x15b   : > { %p2304_p7 = pneg %p2303_p6 }
 0x15d   : > { %p2309_p11 = pnand %p2308_p10, %p2304_p7 }
 0x15f   : > { %2312 = shalt.err (!%p2309_p11)
}
 0x160   : > { %s2374_s27 = smov 64   ;;  %s2375_s28 = smov 4  }
 0x161   : > { %2192 = dma.vmem_to_hbm [thread:$0]  (%p2436_p4), %s2775_s30, 4096, %s2773_s6, %s2781_s15, %s2374_s27, %s2374_s27, %s2375_s28  }
 0x162 PF: > { %p2204_p13 = scmp.ge.s32.totalorder %s2367_s17, 2  ;;  %s1515_s29 = sand.u32 1, %s2347_s12  }
 0x163   : > { %s1516_s4 = scalar_lea.sflag [#allocation4], %s1515_s29 }
 0x164   : > { %p2199_p0 = pnand %p2204_p13, %p2443_p8 }
 0x166   : > { %p2200_p1 = pneg %p2199_p0 }
 0x168   : > { %2342 = dma.done.wait (%p2200_p1), %s1516_s4, 4096  }
 0x169   : > { %2344 = vsyncadd (%p2200_p1), %s1516_s4, 4294963200  ;;  %s17_s17 = sadd.s32 1, %s2367_s17   ;;  %s2834_s12 = smov %s2351_s13 }
 0x16a   : > { %p14_p2 = scmp.ge.s32.totalorder %s17_s17, 4   ;;  %s2835_s13 = smov %s2355_s14 }
 0x16b   : > { %s2836_s14 = smov %s2449_s25  ;;  %s2837_s15 = smov %s2363_s16 }
 0x16c   : > { %s2838_s16 = smov %s2840_s20  ;;  %16 = sbr.rel (!%p14_p2) target bundleno = 5 (0x5), region = 75 }
 0x171   :  { %1521 = vsyncpa [#allocation3], 1 }
 0x172   :  { %1523 = vsyncpa [#allocation3 + $0x1], 1 }
 0x173   :  { %1524 = vsyncpa [#allocation4], 1 }
 0x174   :  { %1526 = vsyncpa [#allocation4 + $0x1], 1 }

</bundles_post_ra>
